<compile_context>
chip_gen: v7x
topology: tpu7x:2x2x1
jax: 0.10.0
libtpu: 0.0.40
codegen_flags: <defaults>
</compile_context>

<pallas_src>
import numpy as np
from numpy import sin, cos, tan, pi, arcsin, arctan
from functools import lru_cache, partial

import jax
import jax.numpy as jnp
from jax.experimental import pallas as pl
from jax.experimental.pallas import tpu as pltpu


# ----------------------------------------------------------------------------
# Faithful numpy port of the coordinate-generation helpers from the PyTorch code
# ----------------------------------------------------------------------------
@lru_cache(None)
def get_xy(delta_phi, delta_theta, ksize):
    grid = []
    for y in range(ksize):
        row = []
        for x in range(ksize):
            row = row + [(tan((x - (ksize - 1) / 2) * delta_theta),
                          -1 / cos((x - (ksize - 1) / 2) * delta_theta)
                          * tan((y - (ksize - 1) / 2) * delta_phi))]
        grid = grid + [row]
    return np.array(grid)


@lru_cache(None)
def cal_index(h, w, img_r, img_c, ksize):
    phi = -((img_r + 0.5) / h * pi - pi / 2)
    theta = (img_c + 0.5) / w * 2 * pi - pi
    delta_phi = pi / h
    delta_theta = 2 * pi / w
    xys = get_xy(delta_phi, delta_theta, ksize)
    x = xys[..., 0]
    y = xys[..., 1]
    with np.errstate(divide='ignore', invalid='ignore'):
        rho = np.sqrt(x ** 2 + y ** 2)
        v = arctan(rho)
        new_phi = arcsin(cos(v) * sin(phi) + y * sin(v) * cos(phi) / rho)
        new_theta = theta + arctan(
            x * sin(v) / (rho * cos(phi) * cos(v) - y * sin(phi) * sin(v)))
    new_r = (-new_phi + pi / 2) * h / pi - 0.5
    new_c = (new_theta + pi) * w / 2 / pi - 0.5
    new_c = (new_c + w) % w
    new_result = np.stack([new_r, new_c], axis=-1)
    if ksize % 2 != 0:
        new_result[int((ksize - 1) / 2), int((ksize - 1) / 2)] = (img_r, img_c)
    return new_result


@lru_cache(None)
def _gen_filters_coordinates(h, w, ksize, stride):
    co = np.array([[cal_index(h, w, i, j, ksize) for j in range(0, w, stride)]
                   for i in range(0, h, stride)])
    return np.ascontiguousarray(co.transpose([4, 0, 1, 2, 3]))


def gen_filters_coordinates(h, w, ksize=3, stride=1):
    assert isinstance(h, int) and isinstance(w, int)
    return _gen_filters_coordinates(h, w, ksize, stride).copy()


def _precompute_bilinear(h, w, ksize, stride):
    """Corner indices / weights matching torch grid_sample(mode='bilinear',
    padding_mode='zeros', align_corners=False) applied to the generated grid."""
    co = gen_filters_coordinates(h, w, ksize, stride)      # (2, Ho, Wo, k, k)  [row, col]
    # normalization done in gen_grid_coordinates ...
    g_row = co[0] * 2.0 / h - 1.0
    g_col = co[1] * 2.0 / w - 1.0
    # ... followed by grid_sample's un-normalization (align_corners=False)
    py = ((g_row + 1.0) * h - 1.0) / 2.0
    px = ((g_col + 1.0) * w - 1.0) / 2.0

    y0 = np.floor(py)
    x0 = np.floor(px)
    wy = py - y0
    wx = px - x0
    y1 = y0 + 1.0
    x1 = x0 + 1.0

    def inb(v, size):
        return ((v >= 0) & (v <= size - 1)).astype(np.float64)

    # corner order: (y0,x0), (y0,x1), (y1,x0), (y1,x1)
    ys = np.stack([y0, y0, y1, y1], axis=0)
    xs = np.stack([x0, x1, x0, x1], axis=0)
    ws = np.stack([(1 - wy) * (1 - wx), (1 - wy) * wx,
                   wy * (1 - wx), wy * wx], axis=0)
    ws = ws * inb(ys, h) * inb(xs, w)                      # zeros padding
    yi = np.clip(ys, 0, h - 1).astype(np.int32)
    xi = np.clip(xs, 0, w - 1).astype(np.int32)
    return yi, xi, ws.astype(np.float32)                   # each (4, Ho, Wo, k, k)


# ----------------------------------------------------------------------------
# Pallas kernel: im2col matmul + bias (bilinear combine already fused upstream)
# ----------------------------------------------------------------------------
_LANE = 128


def _round_up(x, m):
    return ((x + m - 1) // m) * m


def _vmem_budget_bytes():
    """Generation-aware scoped-VMEM budget: ~70% of the per-core capacity,
    conservative 64 MiB (v7x per-TC) fallback, clamped to a safe range."""
    cap = 64 * 1024 * 1024
    try:
        info = pltpu.get_tpu_info()
        cap = int(getattr(info, "vmem_capacity_bytes", cap)) or cap
    except Exception:
        pass
    budget = int(cap * 0.70)
    return max(32 * 1024 * 1024, min(budget, 112 * 1024 * 1024))


def _pick_grid(M, K, N, in_itemsize, tm_max, budget, min_steps=4):
    """Largest layout-granular M tile whose VMEM blocks (with real lane /
    sublane padding) fit the budget; capped so the grid has >= min_steps
    iterations (2 per v7x TensorCore) and preferably an even step count."""
    sub = 8 if in_itemsize >= 4 else 16              # f32 / bf16 sublane packing
    K_lane = _round_up(K, _LANE)                     # col block K lane-padded in VMEM
    K_sub = _round_up(K, sub)                        # wmat K sublane-padded in VMEM
    N_lane = _round_up(N, _LANE)                     # N lane-padded in VMEM
    headroom = 2 * 1024 * 1024                       # compiler temporaries / acc
    fixed = (2 * K_sub * N_lane * in_itemsize        # conv weight (double-buffered)
             + 2 * 8 * N_lane * 4                    # bias (double-buffered)
             + headroom)
    per_row = 2 * K_lane * in_itemsize + 2 * N_lane * 4   # col block + out block
    tm = (budget - fixed) // per_row
    tm = max(sub, min(tm, tm_max, _round_up(M, sub)))
    tm = max(sub, (tm // sub) * sub)
    if M > min_steps * sub:                          # keep >= min_steps grid steps
        tm = min(tm, _round_up(-(-M // min_steps), sub))
    steps = -(-M // tm)
    if steps > 1 and steps % 2 == 1:                 # balance v7x's two TensorCores
        alt = max(sub, _round_up(-(-M // (steps + 1)), sub))
        if -(-M // alt) % 2 == 0:
            tm = alt
            steps = -(-M // alt)
    return int(tm), int(steps * tm), int(steps)


def _sphere_conv_kernel(col_ref, w_ref, b_ref, o_ref):
    # col_ref: (tm, K) im2col rows (bilinear combine done in the XLA producer)
    # w_ref  : (K, N) reshaped conv weight;  b_ref: (1, N);  o_ref: (tm, N)
    acc = jnp.dot(col_ref[...], w_ref[...], preferred_element_type=jnp.float32)
    o_ref[...] = (acc + b_ref[...]).astype(o_ref.dtype)


@partial(jax.jit, static_argnames=("ksize", "stride", "tm_max", "compute_dtype"))
def sphere_conv2d(x, weight, bias, *, ksize=3, stride=1, tm_max=1024,
                  compute_dtype=jnp.float32):
    """x: (B, C, H, W) f32 NCHW; weight: (out_c, C, k, k); bias: (out_c,)."""
    B, C, H, W = x.shape
    out_c = weight.shape[0]
    Ho = len(range(0, H, stride))
    Wo = len(range(0, W, stride))
    K = C * ksize * ksize
    M = B * Ho * Wo
    # Lane-pad N only when out_c is large enough that unmasked stores beat the
    # extra output bytes; small out_c keeps the full-dim (legal) output block.
    N = _round_up(out_c, _LANE) if out_c >= 64 else out_c

    yi, xi, ws = _precompute_bilinear(H, W, ksize, stride)   # each (4, Ho, Wo, k, k)

    # XLA producer: gather the 4 corners, fold in the bilinear weights and
    # reduce over the corner axis -> ONE (M, K) im2col stream into the kernel.
    gathered = x[:, :, jnp.asarray(yi), jnp.asarray(xi)]     # (B, C, 4, Ho, Wo, k, k)
    col = jnp.sum(gathered * jnp.asarray(ws)[None, None], axis=2)   # (B, C, Ho, Wo, k, k)
    col = jnp.transpose(col, (0, 2, 3, 1, 4, 5)).reshape(M, K)      # K order = (c, ky, kx)
    col = col.astype(compute_dtype)                          # cast AFTER the corner sum

    wmat = weight.reshape(out_c, K).T.astype(compute_dtype)  # (K, out_c)
    bias_f32 = bias.astype(jnp.float32)
    if N != out_c:
        wmat = jnp.pad(wmat, ((0, 0), (0, N - out_c)))       # zero columns
        bias_f32 = jnp.pad(bias_f32, (0, N - out_c))
    bias2d = bias_f32.reshape(1, N)

    in_itemsize = jnp.dtype(compute_dtype).itemsize
    budget = _vmem_budget_bytes()
    tm, M_pad, steps = _pick_grid(M, K, N, in_itemsize, tm_max, budget)
    if M_pad != M:
        col = jnp.pad(col, ((0, M_pad - M), (0, 0)))

    cost = pl.CostEstimate(
        flops=2 * M_pad * K * N,
        transcendentals=0,
        bytes_accessed=(M_pad * K * in_itemsize       # im2col stream
                        + K * N * in_itemsize         # conv weight
                        + N * 4                       # bias
                        + M_pad * N * 4))             # output

    out = pl.pallas_call(
        _sphere_conv_kernel,
        out_shape=jax.ShapeDtypeStruct((M_pad, N), jnp.float32),
        grid=(steps,),
        in_specs=[
            pl.BlockSpec((tm, K), lambda i: (i, 0)),  # streamed im2col rows
            pl.BlockSpec((K, N), lambda i: (0, 0)),   # resident conv weight
            pl.BlockSpec((1, N), lambda i: (0, 0)),   # resident bias
        ],
        out_specs=pl.BlockSpec((tm, N), lambda i: (i, 0)),
        compiler_params=pltpu.CompilerParams(
            dimension_semantics=("parallel",),
            vmem_limit_bytes=budget),
        cost_estimate=cost,
    )(col, wmat, bias2d)

    out = out[:M, :out_c].reshape(B, Ho, Wo, out_c)
    return jnp.transpose(out, (0, 3, 1, 2))                  # back to NCHW


# ----------------------------------------------------------------------------
# Pure-JAX reference (same math, no Pallas) for verification
# ----------------------------------------------------------------------------
def sphere_conv2d_ref(x, weight, bias, ksize=3, stride=1):
    B, C, H, W = x.shape
    out_c = weight.shape[0]
    Ho = len(range(0, H, stride))
    Wo = len(range(0, W, stride))
    K = C * ksize * ksize
    M = B * Ho * Wo
    yi, xi, ws = _precompute_bilinear(H, W, ksize, stride)
    gathered = x[:, :, jnp.asarray(yi), jnp.asarray(xi)]
    vals = jnp.transpose(gathered, (2, 0, 3, 4, 1, 5, 6)).reshape(4, M, K)
    wts = jnp.broadcast_to(
        jnp.asarray(ws)[:, None, :, :, None, :, :],
        (4, B, Ho, Wo, C, ksize, ksize)).reshape(4, M, K)
    col = jnp.sum(vals * wts, axis=0)
    out = col @ weight.reshape(out_c, K).T + bias[None, :]
    return jnp.transpose(out.reshape(B, Ho, Wo, out_c), (0, 3, 1, 2))


if __name__ == "__main__":
    # Small deterministic setup consistent with the module.
    B, in_c, H, W = 2, 4, 16, 16
    out_c, ksize, stride = 8, 3, 1

    key = jax.random.PRNGKey(0)
    kx, kw = jax.random.split(key)
    x = jax.random.normal(kx, (B, in_c, H, W), dtype=jnp.float32)

    # kaiming_uniform_(a=sqrt(5)) -> U(-1/sqrt(fan_in), 1/sqrt(fan_in)); bias zeroed.
    fan_in = in_c * ksize * ksize
    bound = 1.0 / np.sqrt(fan_in)
    weight = jax.random.uniform(kw, (out_c, in_c, ksize, ksize),
                                minval=-bound, maxval=bound, dtype=jnp.float32)
    bias = jnp.zeros((out_c,), dtype=jnp.float32)

    y_ref = jax.block_until_ready(
        sphere_conv2d_ref(x, weight, bias, ksize=ksize, stride=stride))

    # f32 path (exact module semantics); exercises the small-out_c (unpadded N)
    # output branch and the >=4-step parallel grid.
    y = jax.block_until_ready(
        sphere_conv2d(x, weight, bias, ksize=ksize, stride=stride))
    assert y.shape == (B, out_c, H // stride, W // stride), y.shape
    np.testing.assert_allclose(np.asarray(y), np.asarray(y_ref),
                               rtol=1e-5, atol=1e-5)

    # bf16 streaming path (opt-in; worthwhile on v5e/v6e/v7x alike — the cast
    # happens after the corner combine, f32 accumulation on the MXU).
    y_bf16 = jax.block_until_ready(
        sphere_conv2d(x, weight, bias, ksize=ksize, stride=stride,
                      compute_dtype=jnp.bfloat16))
    np.testing.assert_allclose(np.asarray(y_bf16), np.asarray(y_ref),
                               rtol=5e-2, atol=5e-2)

    # Second config: exercises the lane-padded-N branch (out_c >= 64),
    # non-zero bias and stride > 1.
    B2, c2, H2, W2, oc2, st2 = 1, 3, 8, 8, 64, 2
    k2 = jax.random.PRNGKey(1)
    kx2, kw2 = jax.random.split(k2)
    x2 = jax.random.normal(kx2, (B2, c2, H2, W2), dtype=jnp.float32)
    w2 = jax.random.uniform(kw2, (oc2, c2, ksize, ksize),
                            minval=-0.2, maxval=0.2, dtype=jnp.float32)
    b2 = 0.1 * jax.random.normal(jax.random.PRNGKey(2), (oc2,), dtype=jnp.float32)
    y2 = jax.block_until_ready(
        sphere_conv2d(x2, w2, b2, ksize=ksize, stride=st2))
    y2_ref = jax.block_until_ready(
        sphere_conv2d_ref(x2, w2, b2, ksize=ksize, stride=st2))
    np.testing.assert_allclose(np.asarray(y2), np.asarray(y2_ref),
                               rtol=1e-5, atol=1e-5)

    print("KERNEL_OK")
</pallas_src>

<mosaic_0001>
module attributes {stable_mosaic.version = 11 : i64} {
  func.func @_sphere_conv_kernel(%arg0: i32, %arg1: memref<128x36xf32, #tpu.memory_space<vmem>>, %arg2: memref<36x8xf32, #tpu.memory_space<vmem>>, %arg3: memref<1x8xf32, #tpu.memory_space<vmem>>, %arg4: memref<128x8xf32, #tpu.memory_space<vmem>>) attributes {dimension_semantics = [#tpu.dimension_semantics<parallel>], iteration_bounds = array<i64: 4>, scalar_prefetch = 0 : i64, scratch_operands = 0 : i64, tpu.core_type = #tpu.core_type<tc>, window_params = [{transform_indices = @transform_0, window_bounds = array<i64: 128, 36>}, {pipeline_mode = #tpu.pipeline_mode<synchronous>, transform_indices = @transform_1, window_bounds = array<i64: 36, 8>}, {pipeline_mode = #tpu.pipeline_mode<synchronous>, transform_indices = @transform_2, window_bounds = array<i64: 1, 8>}, {transform_indices = @transform_3, window_bounds = array<i64: 128, 8>}]} {
    %c0 = arith.constant 0 : index
    %c0_0 = arith.constant 0 : index
    %0 = vector.load %arg1[%c0, %c0_0] : memref<128x36xf32, #tpu.memory_space<vmem>>, vector<128x36xf32>
    %c0_1 = arith.constant 0 : index
    %c0_2 = arith.constant 0 : index
    %1 = vector.load %arg2[%c0_1, %c0_2] : memref<36x8xf32, #tpu.memory_space<vmem>>, vector<36x8xf32>
    %cst = arith.constant dense<0.000000e+00> : vector<128x8xf32>
    %2 = tpu.matmul %0, %1, %cst {dimension_numbers = #tpu.dot_dimension_numbers<[1], [0], [0], [1], [0, 0, 1, 1], [], []>} : vector<128x36xf32>, vector<36x8xf32>, vector<128x8xf32> -> vector<128x8xf32>
    %c0_3 = arith.constant 0 : index
    %c0_4 = arith.constant 0 : index
    %3 = vector.load %arg3[%c0_3, %c0_4] : memref<1x8xf32, #tpu.memory_space<vmem>>, vector<1x8xf32>
    %4 = vector.broadcast %3 : vector<1x8xf32> to vector<128x8xf32>
    %5 = arith.addf %2, %4 : vector<128x8xf32>
    %c0_5 = arith.constant 0 : index
    %c0_6 = arith.constant 0 : index
    %6 = vector.load %arg4[%c0_5, %c0_6] : memref<128x8xf32, #tpu.memory_space<vmem>>, vector<128x8xf32>
    tpu.vector_store %arg4[%c0_5, %c0_6], %5 {strides = array<i32>} : memref<128x8xf32, #tpu.memory_space<vmem>>, vector<128x8xf32>,
    return
  }
  func.func @transform_0(%arg0: i32) -> (i32, i32) {
    %c0_i32 = arith.constant 0 : i32
    %c0_i32_0 = arith.constant 0 : i32
    return %arg0, %c0_i32 : i32, i32
  }
  func.func @transform_1(%arg0: i32) -> (i32, i32) {
    %c0_i32 = arith.constant 0 : i32
    %c0_i32_0 = arith.constant 0 : i32
    %c0_i32_1 = arith.constant 0 : i32
    return %c0_i32, %c0_i32_0 : i32, i32
  }
  func.func @transform_2(%arg0: i32) -> (i32, i32) {
    %c0_i32 = arith.constant 0 : i32
    %c0_i32_0 = arith.constant 0 : i32
    %c0_i32_1 = arith.constant 0 : i32
    return %c0_i32, %c0_i32_0 : i32, i32
  }
  func.func @transform_3(%arg0: i32) -> (i32, i32) {
    %c0_i32 = arith.constant 0 : i32
    %c0_i32_0 = arith.constant 0 : i32
    return %arg0, %c0_i32 : i32, i32
  }
}

</mosaic_0001>

<bundles_post_ra>
// kernel: sphere_conv2d.1
= control target key start
LH: loop header
LB: loop body
LE: loop exit
PB: predicated region body
PF: predicated region fallthrough
CT: control target
= control target key end

     0   :  { %s607_s12 = smov 0   ;;  %s721_s0 = inlined_call_operand.vmem [shape: f32[512,36], index: 0, kind: input, shape index: {}]   ;;  %s722_s1 = inlined_call_operand.vmem [shape: f32[36,8], index: 1, kind: input, shape index: {}]   ;;  %s723_s2 = inlined_call_operand.vmem [shape: f32[1,8], index: 2, kind: input, shape index: {}]   ;;  %s724_s3 = inlined_call_operand.vmem [shape: f32[512,8], index: 3, kind: output, shape index: {}]  }
   0x1 LB: > { %s473_s13 = sadd.s32 4294967295, %s585_s12   ;;  %p477_p0 = scmp.ge.s32.totalorder %s585_s12, 1  ;;  %s585_s12 = sphi %s607_s12, %s13_s12  }
   0x2   : > { %p138_p1 = scmp.lt.s32.totalorder %s585_s12, 5 }
   0x4   : > { %p139_p2 = pnand %p477_p0, %p138_p1 }
   0x5   : > { %v190_v0 = vld [vmem:[%s722_s1] sm:$0xff] (!%p139_p2)  ;;  %v191_v1 = vld [vmem:[%s722_s1 + $0x8] sm:$0xff] (!%p139_p2)  ;;  %v192_v2 = vld [vmem:[%s722_s1 + $0x10] sm:$0xff] (!%p139_p2)  ;;  %s478_s20 = sshll.u32 (!%p139_p2), %s473_s13, 4  ;;  %vm251_vm0 = vcmask (!%p139_p2), 1043456   ;;  %vm202_vm1 = vcmask (!%p139_p2), 293888  }
   0x6   : > { %142 = sbr.rel (%p139_p2) target bundleno = 247 (0xf7), region = 32  ;;  %v557_v3 = vpack.c.bf16 (!%p139_p2), %v191_v1, %v190_v0  ;;  %v193_v4 = vld [vmem:[%s722_s1 + $0x18] sm:$0xff] (!%p139_p2)  ;;  %p163_p3 = scmp.lt.s32.totalorder (!%p139_p2), %s478_s20, 63  ;;  %v194_v6 = vld [vmem:[%s722_s1 + $0x20] sm:$0xf] (!%p139_p2)  ;;  %vm400_vm2 = vcmask (!%p139_p2), 64512  }
   0x7   : > { %v561_v5 = vpack.c.bf16 (!%p139_p2), %v193_v4, %v192_v2  ;;  %v482_v23 = vld [vmem:[%s723_s2] ss:$0 sm:$0xff] (!%p139_p2) }
   0x8   : > { %558 = vmatprep.subr.bf16.mxu0 (!%p139_p2), %v557_v3  ;;  %565 = vmatprep.subr.bf16.mxu1 (!%p139_p2), %v557_v3 }
   0x9   : > { %560 = vmatpush3.bf16.msra.mxu0 (!%p139_p2), %v557_v3  ;;  %568 = vmatpush3.bf16.msra.mxu1 (!%p139_p2), %v557_v3 }
   0xa   : > { %562 = vmatprep.subr.bf16.mxu0 (!%p139_p2), %v561_v5  ;;  %566 = vmatprep.subr.bf16.mxu1 (!%p139_p2), %v561_v5 }
   0xd   : > { %s726_s20 = smov (!%p163_p3, %s478_s20), 63  ;;  %564 = vmatpush3.bf16.msra.mxu0 %v561_v5  ;;  %569 = vmatpush3.bf16.msra.mxu1 %v561_v5 }
   0xe   : > { %s479_s23 = sshll.u32 %s726_s20, 3  ;;  %531 = vmatprep.subr.msk.mxu0 %vm251_vm0, %v194_v6  ;;  %567 = vmatprep.subr.msk.mxu1 %vm251_vm0, %v194_v6 }
   0xf   : > { %s638_s28 = scalar_lea.vmem %s721_s0, %s479_s23  ;;  %s684_s6 = scalar_lea.vmem %s724_s3, %s479_s23 }
  0x10   : > { %v174_v7 = vld [vmem:[%s638_s28] sm:$0xff]  ;;  %v175_v9 = vld [vmem:[%s638_s28 + $0x8] sm:$0xff]  ;;  %v176_v11 = vld [vmem:[%s638_s28 + $0x10] sm:$0xff] }
  0x11   : > { %v182_v8 = vld [vmem:[%s638_s28 + $0x40] sm:$0xff]  ;;  %533 = vmatprep.mubr.msk.f32.mxu0 %vm202_vm1, %v174_v7  ;;  %v183_v10 = vld [vmem:[%s638_s28 + $0x48] sm:$0xff]  ;;  %v184_v12 = vld [vmem:[%s638_s28 + $0x50] sm:$0xff]  ;;  %532 = vmatpush3.msk.msra.mxu0 %vm251_vm0, %v194_v6 }
  0x12   : > { %545 = vmatprep.mubr.msk.f32.mxu1 %vm202_vm1, %v182_v8  ;;  %570 = vmatpush3.msk.msra.mxu1 %vm251_vm0, %v194_v6  ;;  %v177_v13 = vld [vmem:[%s638_s28 + $0x18] sm:$0xff]  ;;  %v178_v15 = vld [vmem:[%s638_s28 + $0x20] sm:$0xff]  ;;  %v179_v17 = vld [vmem:[%s638_s28 + $0x28] sm:$0xff] }
  0x13   : > { %534 = vmatmul.mubr.msk.f32.vlgmr.msra.gmra.mrb[0].mxu0 %vm202_vm1, %v175_v9  ;;  %546 = vmatmul.mubr.msk.f32.vlgmr.msra.gmra.mrb[0].mxu1 %vm202_vm1, %v183_v10  ;;  %v185_v14 = vld [vmem:[%s638_s28 + $0x58] sm:$0xff]  ;;  %v186_v16 = vld [vmem:[%s638_s28 + $0x60] sm:$0xff]  ;;  %v187_v18 = vld [vmem:[%s638_s28 + $0x68] sm:$0xff] }
  0x14   : > { %536 = vmatprep.mubr.msk.f32.mxu0 %vm202_vm1, %v176_v11  ;;  %548 = vmatprep.mubr.msk.f32.mxu1 %vm202_vm1, %v184_v12  ;;  %v180_v19 = vld [vmem:[%s638_s28 + $0x30] sm:$0xff]  ;;  %v181_v21 = vld [vmem:[%s638_s28 + $0x38] sm:$0xff] }
  0x15   : > { %v188_v20 = vld [vmem:[%s638_s28 + $0x70] sm:$0xff]  ;;  %v189_v22 = vld [vmem:[%s638_s28 + $0x78] sm:$0xff] }
  0x17   : > { %537 = vmatmul.mubr.msk.f32.gmra.mrb[2].mxu0 %vm202_vm1, %v177_v13  ;;  %549 = vmatmul.mubr.msk.f32.gmra.mrb[2].mxu1 %vm202_vm1, %v185_v14 }
  0x18   : > { %539 = vmatprep.mubr.msk.f32.mxu0 %vm202_vm1, %v178_v15  ;;  %551 = vmatprep.mubr.msk.f32.mxu1 %vm202_vm1, %v186_v16 }
  0x1b   : > { %540 = vmatmul.mubr.msk.f32.gmra.mrb[4].mxu0 %vm202_vm1, %v179_v17  ;;  %552 = vmatmul.mubr.msk.f32.gmra.mrb[4].mxu1 %vm202_vm1, %v187_v18 }
  0x1c   : > { %542 = vmatprep.mubr.msk.f32.mxu0 %vm202_vm1, %v180_v19  ;;  %554 = vmatprep.mubr.msk.f32.mxu1 %vm202_vm1, %v188_v20 }
  0x1f   : > { %543 = vmatmul.mubr.msk.f32.gmra.mrb[6].mxu0 %vm202_vm1, %v181_v21  ;;  %555 = vmatmul.mubr.msk.f32.gmra.mrb[6].mxu1 %vm202_vm1, %v189_v22 }
  0xe6   : > { %v535_v24 = vpop.f32.mrb[0].mxu0  ;;  %v547_v25 = vpop.f32.mrb[0].mxu1 }
  0xe7   : > { %v327_v26 = vadd.f32 %v535_v24, %v482_v23  ;;  %v367_v27 = vadd.f32 %v547_v25, %v482_v23  ;;  %v321_v28 = vpop.f32.mrb[1].mxu0  ;;  %v361_v29 = vpop.f32.mrb[1].mxu1 }
  0xe8   : > { %v322_v30 = vadd.f32 %v482_v23, %v321_v28  ;;  %v362_v31 = vadd.f32 %v482_v23, %v361_v29 }
  0xe9   : > { %402 = vst.msk [vmem:[%s684_s6 + $0x8] sm:$0xff] %vm400_vm2, %v327_v26  ;;  %410 = vst.msk [vmem:[%s684_s6 + $0x48] sm:$0xff] %vm400_vm2, %v367_v27 }
  0xea   : > { %401 = vst.msk [vmem:[%s684_s6] sm:$0xff] %vm400_vm2, %v322_v30  ;;  %409 = vst.msk [vmem:[%s684_s6 + $0x40] sm:$0xff] %vm400_vm2, %v362_v31  ;;  %v538_v32 = vpop.f32.mrb[2].mxu0  ;;  %v550_v33 = vpop.f32.mrb[2].mxu1 }
  0xeb   : > { %v337_v34 = vadd.f32 %v538_v32, %v482_v23  ;;  %v377_v35 = vadd.f32 %v550_v33, %v482_v23  ;;  %v331_v36 = vpop.f32.mrb[3].mxu0  ;;  %v371_v37 = vpop.f32.mrb[3].mxu1 }
  0xec   : > { %v332_v38 = vadd.f32 %v482_v23, %v331_v36  ;;  %v372_v39 = vadd.f32 %v482_v23, %v371_v37 }
  0xed   : > { %404 = vst.msk [vmem:[%s684_s6 + $0x18] sm:$0xff] %vm400_vm2, %v337_v34  ;;  %412 = vst.msk [vmem:[%s684_s6 + $0x58] sm:$0xff] %vm400_vm2, %v377_v35 }
  0xee   : > { %403 = vst.msk [vmem:[%s684_s6 + $0x10] sm:$0xff] %vm400_vm2, %v332_v38  ;;  %411 = vst.msk [vmem:[%s684_s6 + $0x50] sm:$0xff] %vm400_vm2, %v372_v39  ;;  %v541_v40 = vpop.f32.mrb[4].mxu0  ;;  %v553_v41 = vpop.f32.mrb[4].mxu1 }
  0xef   : > { %v347_v42 = vadd.f32 %v541_v40, %v482_v23  ;;  %v387_v43 = vadd.f32 %v553_v41, %v482_v23  ;;  %v341_v44 = vpop.f32.mrb[5].mxu0  ;;  %v381_v45 = vpop.f32.mrb[5].mxu1 }
  0xf0   : > { %v342_v46 = vadd.f32 %v482_v23, %v341_v44  ;;  %v382_v47 = vadd.f32 %v482_v23, %v381_v45 }
  0xf1   : > { %406 = vst.msk [vmem:[%s684_s6 + $0x28] sm:$0xff] %vm400_vm2, %v347_v42  ;;  %414 = vst.msk [vmem:[%s684_s6 + $0x68] sm:$0xff] %vm400_vm2, %v387_v43 }
  0xf2   : > { %405 = vst.msk [vmem:[%s684_s6 + $0x20] sm:$0xff] %vm400_vm2, %v342_v46  ;;  %413 = vst.msk [vmem:[%s684_s6 + $0x60] sm:$0xff] %vm400_vm2, %v382_v47  ;;  %v544_v48 = vpop.f32.mrb[6].mxu0  ;;  %v556_v49 = vpop.f32.mrb[6].mxu1 }
  0xf3   : > { %v357_v50 = vadd.f32 %v544_v48, %v482_v23  ;;  %v397_v51 = vadd.f32 %v556_v49, %v482_v23  ;;  %v351_v52 = vpop.f32.mrb[7].mxu0  ;;  %v391_v53 = vpop.f32.mrb[7].mxu1 }
  0xf4   : > { %v352_v54 = vadd.f32 %v482_v23, %v351_v52  ;;  %v392_v55 = vadd.f32 %v482_v23, %v391_v53 }
  0xf5   : > { %408 = vst.msk [vmem:[%s684_s6 + $0x38] sm:$0xff] %vm400_vm2, %v357_v50  ;;  %416 = vst.msk [vmem:[%s684_s6 + $0x78] sm:$0xff] %vm400_vm2, %v397_v51 }
  0xf6   : > { %407 = vst.msk [vmem:[%s684_s6 + $0x30] sm:$0xff] %vm400_vm2, %v352_v54  ;;  %415 = vst.msk [vmem:[%s684_s6 + $0x70] sm:$0xff] %vm400_vm2, %v392_v55 }
  0xf7 PF: > { %s13_s12 = sadd.s32 1, %s585_s12  }
  0xf8   : > { %p10_p4 = scmp.ge.s32.totalorder %s13_s12, 6  }
  0xfa   :  { %12 = sbr.rel (!%p10_p4) target bundleno = 1 (0x1), region = 62 }

</bundles_post_ra>
